<compile_context>
chip_gen: v5e
topology: v5e:2x2
jax: 0.10.0
libtpu: 0.0.40
codegen_flags: <defaults>
</compile_context>

<pallas_src>
import math
from functools import partial

import jax
import jax.numpy as jnp
from jax.experimental import pallas as pl
from jax.experimental.pallas import tpu as pltpu


def _repeat_batch_kernel(x_ref, o_ref, *, batch, k, m):
    """x_ref: (B, tf) input tile (VMEM, resident); o_ref: (k*B, tf) output tile.

    Replicates the input tile k times along the row axis.  `m` is an inner
    replication factor (divides k) chosen so m*B is sublane-aligned whenever
    possible, turning the VMEM stores into full, unmasked stores.
    """
    if m > 1:
        xm = jnp.concatenate([x_ref[...]] * m, axis=0)  # (m*B, tf), aligned rows
        for j in range(k // m):  # unrolled at trace time
            o_ref[pl.ds(j * m * batch, m * batch), :] = xm
    else:
        for j in range(k):
            o_ref[pl.ds(j * batch, batch), :] = x_ref[...]


def _choose_tiling(B, F, repeat, itemsize, sub, vmem_budget_bytes):
    """Pick (k, tf): k copies per output block (divides `repeat`), tf feature
    tile (divides F, multiple of 128 unless tf == F).  Prefer full-F tiles and
    the largest k that fits the VMEM budget (fewer, larger output DMAs)."""

    def vmem_bytes(k, tf):
        # double-buffered input tile + double-buffered output tile
        return 2 * (B * tf + k * B * tf) * itemsize

    # k candidates: output block rows (k*B) must be a multiple of the sublane
    # tile, or the block must span the whole output batch dim (k == repeat).
    ks = [d for d in range(repeat, 0, -1)
          if repeat % d == 0 and (d == repeat or (d * B) % sub == 0)]

    # feature-tile candidates: F itself, plus lane-aligned divisors of F.
    tfs = [F] + [t for t in range(F - 128, 127, -128)
                 if F % t == 0 and t % 128 == 0]

    for tf in tfs:
        for k in ks:
            if vmem_bytes(k, tf) <= vmem_budget_bytes:
                return k, tf
    # Nothing fits the budget (huge, lane-unfriendly F): take the smallest
    # legal config and let vmem_limit_bytes stretch.
    # TODO(synk): add padded feature tiling for F not a multiple of 128.
    return ks[-1], tfs[-1]


def _choose_inner_rep(B, k, tf, itemsize, sub, max_vreg_bytes=64 * 1024):
    """Smallest divisor m of k with m*B sublane-aligned and the replicated
    slab small enough to stay in vregs; else 1 (masked-store fallback)."""
    if B % sub == 0:
        return 1
    for m in range(2, k + 1):
        if k % m == 0 and (m * B) % sub == 0:
            if m * B * tf * itemsize <= max_vreg_bytes:
                return m
            break
    return 1


def repeat_batch(img: jnp.ndarray, repeat: int = 32, *,
                 vmem_budget_bytes: int = 12 * 1024 * 1024) -> jnp.ndarray:
    """Pallas equivalent of torch Tensor.repeat(repeat, 1, 1, 1) on NCHW input."""
    B, C, H, W = img.shape
    F = C * H * W
    itemsize = jnp.dtype(img.dtype).itemsize

    # Sublane tile for this dtype (8 for f32, 16 for bf16, 32 for int8).
    sub = max(1, 32 // (8 * itemsize)) * 8

    k, tf = _choose_tiling(B, F, repeat, itemsize, sub, vmem_budget_bytes)
    m = _choose_inner_rep(B, k, tf, itemsize, sub)

    nf = F // tf
    nr = repeat // k
    x2d = img.reshape(B, F)  # lane-dense flat view (free for contiguous NCHW)

    needed = 2 * (B * tf + k * B * tf) * itemsize
    vmem_limit = int(min(48 * 1024 * 1024, max(32 * 1024 * 1024, 2 * needed)))

    kernel = partial(_repeat_batch_kernel, batch=B, k=k, m=m)

    out2d = pl.pallas_call(
        kernel,
        out_shape=jax.ShapeDtypeStruct((repeat * B, F), img.dtype),
        grid_spec=pltpu.PrefetchScalarGridSpec(
            num_scalar_prefetch=0,
            grid=(nf, nr),  # feature tiles outer -> input tile fetched once
            in_specs=[pl.BlockSpec((B, tf), lambda f, r: (0, f))],
            out_specs=pl.BlockSpec((k * B, tf), lambda f, r: (r, f)),
        ),
        compiler_params=pltpu.CompilerParams(
            dimension_semantics=("parallel", "parallel"),
            vmem_limit_bytes=vmem_limit,
        ),
        cost_estimate=pl.CostEstimate(
            flops=0,
            transcendentals=0,
            bytes_accessed=(1 + repeat) * B * F * itemsize,
        ),
    )(x2d)

    return out2d.reshape(repeat * B, C, H, W)


if __name__ == "__main__":
    key = jax.random.PRNGKey(0)
    B, C, H, W = 2, 4, 16, 16
    img = jax.random.normal(key, (B, C, H, W), dtype=jnp.float32)

    # Small config for the demo.
    out = jax.block_until_ready(repeat_batch(img, repeat=4))
    ref = jnp.concatenate([img] * 4, axis=0)
    assert out.shape == (4 * B, C, H, W), out.shape
    assert out.dtype == img.dtype
    assert jnp.array_equal(out, ref), "mismatch vs reference tiling (repeat=4)"

    # Module default repeat=32 (the real configuration).
    out32 = jax.block_until_ready(repeat_batch(img, repeat=32))
    ref32 = jnp.concatenate([img] * 32, axis=0)
    assert out32.shape == (32 * B, C, H, W), out32.shape
    assert jnp.array_equal(out32, ref32), "mismatch vs reference tiling (repeat=32)"

    print("KERNEL_OK")
</pallas_src>

<mosaic_0001>
module attributes {stable_mosaic.version = 11 : i64} {
  func.func @_repeat_batch_kernel(%arg0: i32, %arg1: i32, %arg2: memref<2x1024xf32, #tpu.memory_space<vmem>>, %arg3: memref<8x1024xf32, #tpu.memory_space<vmem>>) attributes {dimension_semantics = [#tpu.dimension_semantics<parallel>, #tpu.dimension_semantics<parallel>], iteration_bounds = array<i64: 1, 1>, scalar_prefetch = 0 : i64, scratch_operands = 0 : i64, tpu.core_type = #tpu.core_type<tc>, window_params = [{transform_indices = @transform_0, window_bounds = array<i64: 2, 1024>}, {transform_indices = @transform_1, window_bounds = array<i64: 8, 1024>}]} {
    %c0 = arith.constant 0 : index
    %c0_0 = arith.constant 0 : index
    %0 = vector.load %arg2[%c0, %c0_0] : memref<2x1024xf32, #tpu.memory_space<vmem>>, vector<2x1024xf32>
    %1 = tpu.concatenate %0, %0, %0, %0 in 0 : vector<2x1024xf32>, vector<2x1024xf32>, vector<2x1024xf32>, vector<2x1024xf32> -> vector<8x1024xf32>
    %c0_1 = arith.constant 0 : index
    %c0_2 = arith.constant 0 : index
    %2 = vector.load %arg3[%c0_1, %c0_2] : memref<8x1024xf32, #tpu.memory_space<vmem>>, vector<8x1024xf32>
    tpu.vector_store %arg3[%c0_1, %c0_2], %1 {strides = array<i32>} : memref<8x1024xf32, #tpu.memory_space<vmem>>, vector<8x1024xf32>,
    return
  }
  func.func @transform_0(%arg0: i32, %arg1: i32) -> (i32, i32) {
    %c0_i32 = arith.constant 0 : i32
    %c0_i32_0 = arith.constant 0 : i32
    return %c0_i32, %arg0 : i32, i32
  }
  func.func @transform_1(%arg0: i32, %arg1: i32) -> (i32, i32) {
    %c0_i32 = arith.constant 0 : i32
    return %arg1, %arg0 : i32, i32
  }
}

</mosaic_0001>

<bundles_post_ra>
// kernel: tpu_custom_call.1
= control target key start
LH: loop header
LB: loop body
LE: loop exit
PB: predicated region body
PF: predicated region fallthrough
CT: control target
= control target key end

     0   :  { %6 = vsyncpa [#allocation3], 0  ;;  %s254_s0 = inlined_call_operand.hbm [shape: f32[2,1024], index: 0, kind: input, shape index: {}]   ;;  %s255_s1 = inlined_call_operand.hbm [shape: f32[8,1024], index: 1, kind: output, shape index: {}]  }
   0x1   :  { %7 = vsyncpa [#allocation4], 0  ;;  %s13_s8 = sshll.u32 %s254_s0, 4  ;;  %s212_s9 = smov [#allocation2]   ;;  %s14_s8 = int_to_ptr.hbm [resolvable:$true] %s13_s8 }
   0x2   :  { %s15_s10 = sshll.u32 %s212_s9, 4  ;;  %s16_s10 = int_to_ptr.vmem [resolvable:$true] %s15_s10 }
   0x3   :  { %18 = dma.hbm_to_vmem [thread:$0]  %s14_s8, 256, %s16_s10, [#allocation3]  }
   0x4   :  { %208 = dma.done.wait [#allocation3], 256  }
   0x5   :  { %209 = vsyncadd [#allocation3], 4294967040  ;;  %v23_v0 = vld [vmem:[#allocation2] sm:$0xff]  ;;  %v24_v1 = vld [vmem:[#allocation2 + $0x8] sm:$0xff]  ;;  %vm106_vm0 = vcmask 1041408   ;;  %vm115_vm1 = vcmask 1043456  }
   0x6   :  { %27 = vst [vmem:[#allocation1] ss:$4 sm:$0xff] %v23_v0  ;;  %vm124_vm2 = vcmask 1045504   ;;  %s213_s0 = smov [#allocation5]   ;;  %s148_s14 = sshll.u32 %s255_s1, 4  ;;  %s149_s14 = int_to_ptr.hbm [resolvable:$true] %s148_s14 }
   0x7   :  { %29 = vst [vmem:[#allocation1 + $0x20] ss:$4 sm:$0xff] %v24_v1  ;;  %s146_s11 = sshll.u32 %s213_s0, 4  ;;  %s147_s11 = int_to_ptr.vmem [resolvable:$true] %s146_s11 }
   0xd   :  { %v30_v2 = vld.sshfl [vmem:[#allocation1] sm:$0xff pattern:$0x73625140]  ;;  %v31_v3 = vld.sshfl [vmem:[#allocation1 + $0x8] sm:$0xff pattern:$0x73625140] }
   0xe   :  { %v32_v4 = vld.sshfl [vmem:[#allocation1 + $0x10] sm:$0xff pattern:$0x73625140]  ;;  %v33_v5 = vld.sshfl [vmem:[#allocation1 + $0x18] sm:$0xff pattern:$0x73625140] }
   0xf   :  { %47 = vst [vmem:[#allocation1 + $0x1] ss:$4 sm:$0xff] %v23_v0  ;;  %v34_v6 = vld.sshfl [vmem:[#allocation1 + $0x20] sm:$0xff pattern:$0x73625140] }
  0x10   :  { %v35_v7 = vld.sshfl [vmem:[#allocation1 + $0x28] sm:$0xff pattern:$0x73625140]  ;;  %v36_v8 = vld.sshfl [vmem:[#allocation1 + $0x30] sm:$0xff pattern:$0x73625140] }
  0x11   :  { %v37_v9 = vld.sshfl [vmem:[#allocation1 + $0x38] sm:$0xff pattern:$0x73625140] }
  0x12   :  { %49 = vst [vmem:[#allocation1 + $0x21] ss:$4 sm:$0xff] %v24_v1 }
  0x16   :  { %v50_v10 = vld.sshfl [vmem:[#allocation1] sm:$0xff pattern:$0x73625140]  ;;  %v51_v11 = vld.sshfl [vmem:[#allocation1 + $0x8] sm:$0xff pattern:$0x73625140] }
  0x17   :  { %v52_v12 = vld.sshfl [vmem:[#allocation1 + $0x10] sm:$0xff pattern:$0x73625140]  ;;  %v53_v13 = vld.sshfl [vmem:[#allocation1 + $0x18] sm:$0xff pattern:$0x73625140]  ;;  %v107_v26 = vsel %vm106_vm0, %v30_v2, %v50_v10  ;;  %v108_v27 = vsel %vm106_vm0, %v31_v3, %v51_v11 }
  0x18   :  { %67 = vst [vmem:[#allocation1 + $0x2] ss:$4 sm:$0xff] %v23_v0  ;;  %v109_v32 = vsel %vm106_vm0, %v32_v4, %v52_v12  ;;  %v110_v33 = vsel %vm106_vm0, %v33_v5, %v53_v13 }
  0x19   :  { %v54_v14 = vld.sshfl [vmem:[#allocation1 + $0x20] sm:$0xff pattern:$0x73625140]  ;;  %v55_v15 = vld.sshfl [vmem:[#allocation1 + $0x28] sm:$0xff pattern:$0x73625140] }
  0x1a   :  { %v56_v16 = vld.sshfl [vmem:[#allocation1 + $0x30] sm:$0xff pattern:$0x73625140]  ;;  %v57_v17 = vld.sshfl [vmem:[#allocation1 + $0x38] sm:$0xff pattern:$0x73625140]  ;;  %v111_v42 = vsel %vm106_vm0, %v34_v6, %v54_v14  ;;  %v112_v45 = vsel %vm106_vm0, %v35_v7, %v55_v15 }
  0x1b   :  { %69 = vst [vmem:[#allocation1 + $0x22] ss:$4 sm:$0xff] %v24_v1  ;;  %v113_v49 = vsel %vm106_vm0, %v36_v8, %v56_v16  ;;  %v114_v53 = vsel %vm106_vm0, %v37_v9, %v57_v17 }
  0x1f   :  { %v70_v18 = vld.sshfl [vmem:[#allocation1] sm:$0xff pattern:$0x73625140]  ;;  %v71_v19 = vld.sshfl [vmem:[#allocation1 + $0x8] sm:$0xff pattern:$0x73625140] }
  0x20   :  { %v72_v20 = vld.sshfl [vmem:[#allocation1 + $0x10] sm:$0xff pattern:$0x73625140]  ;;  %v73_v21 = vld.sshfl [vmem:[#allocation1 + $0x18] sm:$0xff pattern:$0x73625140]  ;;  %v116_v29 = vsel %vm115_vm1, %v107_v26, %v70_v18  ;;  %v117_v31 = vsel %vm115_vm1, %v108_v27, %v71_v19 }
  0x21   :  { %87 = vst [vmem:[#allocation1 + $0x3] ss:$4 sm:$0xff] %v23_v0  ;;  %v118_v37 = vsel %vm115_vm1, %v109_v32, %v72_v20  ;;  %v119_v39 = vsel %vm115_vm1, %v110_v33, %v73_v21 }
  0x22   :  { %v74_v22 = vld.sshfl [vmem:[#allocation1 + $0x20] sm:$0xff pattern:$0x73625140]  ;;  %v75_v23 = vld.sshfl [vmem:[#allocation1 + $0x28] sm:$0xff pattern:$0x73625140] }
  0x23   :  { %v76_v24 = vld.sshfl [vmem:[#allocation1 + $0x30] sm:$0xff pattern:$0x73625140]  ;;  %v77_v25 = vld.sshfl [vmem:[#allocation1 + $0x38] sm:$0xff pattern:$0x73625140]  ;;  %v120_v44 = vsel %vm115_vm1, %v111_v42, %v74_v22  ;;  %v121_v48 = vsel %vm115_vm1, %v112_v45, %v75_v23 }
  0x24   :  { %89 = vst [vmem:[#allocation1 + $0x23] ss:$4 sm:$0xff] %v24_v1  ;;  %v122_v52 = vsel %vm115_vm1, %v113_v49, %v76_v24  ;;  %v123_v56 = vsel %vm115_vm1, %v114_v53, %v77_v25 }
  0x28   :  { %v90_v28 = vld.sshfl [vmem:[#allocation1] sm:$0xff pattern:$0x73625140]  ;;  %v91_v30 = vld.sshfl [vmem:[#allocation1 + $0x8] sm:$0xff pattern:$0x73625140] }
  0x29   :  { %v125_v34 = vsel %vm124_vm2, %v116_v29, %v90_v28  ;;  %v126_v35 = vsel %vm124_vm2, %v117_v31, %v91_v30  ;;  %v92_v36 = vld.sshfl [vmem:[#allocation1 + $0x10] sm:$0xff pattern:$0x73625140]  ;;  %v93_v38 = vld.sshfl [vmem:[#allocation1 + $0x18] sm:$0xff pattern:$0x73625140] }
  0x2a   :  { %133 = vst [vmem:[#allocation5] sm:$0xff] %v125_v34  ;;  %v127_v40 = vsel %vm124_vm2, %v118_v37, %v92_v36  ;;  %v128_v41 = vsel %vm124_vm2, %v119_v39, %v93_v38 }
  0x2b   :  { %134 = vst [vmem:[#allocation5 + $0x8] sm:$0xff] %v126_v35  ;;  %v94_v43 = vld.sshfl [vmem:[#allocation1 + $0x20] sm:$0xff pattern:$0x73625140] }
  0x2c   :  { %135 = vst [vmem:[#allocation5 + $0x10] sm:$0xff] %v127_v40  ;;  %v129_v46 = vsel %vm124_vm2, %v120_v44, %v94_v43  ;;  %v95_v47 = vld.sshfl [vmem:[#allocation1 + $0x28] sm:$0xff pattern:$0x73625140] }
  0x2d   :  { %136 = vst [vmem:[#allocation5 + $0x18] sm:$0xff] %v128_v41  ;;  %v130_v50 = vsel %vm124_vm2, %v121_v48, %v95_v47  ;;  %v96_v51 = vld.sshfl [vmem:[#allocation1 + $0x30] sm:$0xff pattern:$0x73625140] }
  0x2e   :  { %137 = vst [vmem:[#allocation5 + $0x20] sm:$0xff] %v129_v46  ;;  %v131_v54 = vsel %vm124_vm2, %v122_v52, %v96_v51  ;;  %v97_v55 = vld.sshfl [vmem:[#allocation1 + $0x38] sm:$0xff pattern:$0x73625140] }
  0x2f   :  { %138 = vst [vmem:[#allocation5 + $0x28] sm:$0xff] %v130_v50  ;;  %v132_v57 = vsel %vm124_vm2, %v123_v56, %v97_v55 }
  0x30   :  { %139 = vst [vmem:[#allocation5 + $0x30] sm:$0xff] %v131_v54 }
  0x31   :  { %140 = vst [vmem:[#allocation5 + $0x38] sm:$0xff] %v132_v57 }
  0x32   :  { %151 = dma.vmem_to_hbm [thread:$0]  %s147_s11, 1024, %s149_s14, [#allocation4]  }
  0x33   :  { %210 = dma.done.wait [#allocation4], 1024  }
  0x34   :  { %211 = vsyncadd [#allocation4], 4294966272 }
  0x35   :  { %156 = vsyncpa [#allocation3], 1 }
  0x36   :  { %157 = vsyncpa [#allocation4], 1 }

</bundles_post_ra>
